<compile_context>
chip_gen: v5e
topology: v5e:2x2
jax: 0.10.0
libtpu: 0.0.40
codegen_flags: <defaults>
</compile_context>

<pallas_src>
import math

import jax
import jax.numpy as jnp
import numpy as np
from jax.experimental import pallas as pl
from jax.experimental.pallas import tpu as pltpu

_COMPUTE_DTYPE = jnp.bfloat16      # MXU-native operand dtype; accumulate in f32.


# ----------------------------------------------------------------------------
# Helpers: tiling / VMEM budgeting / compiler params.
# ----------------------------------------------------------------------------
def _pick_tile(total, target, mult=16):
    """Largest multiple-of-`mult` divisor of `total` that is <= target; falls
    back to `total` (a block equal to the full dim is always layout-legal).
    The caller's VMEM estimate is computed from the returned tile, so the
    fallback cannot silently exceed the declared limit."""
    target = max(mult, min(int(target), total))
    t = (target // mult) * mult
    while t >= mult:
        if total % t == 0:
            return t
        t -= mult
    return total


def _vmem_cap():
    """Per-chip VMEM budget (~75% of physical).  Conservative 64 MiB physical
    (v7x) if the query is unavailable; v5e/v6e report 128 MiB and get a larger
    budget (bigger tiles amortize per-step overhead)."""
    phys = 64 << 20
    try:
        info = pltpu.get_tpu_info()
        for attr in ("vmem_capacity_bytes", "vmem_bytes", "vmem_size_bytes"):
            v = getattr(info, attr, None)
            if v:
                phys = int(v)
                break
    except Exception:
        pass
    return max(32 << 20, (phys * 3) // 4)


def _mosaic_params(dims, est_bytes, cap):
    vmem = int(min(max(2 * est_bytes, 32 << 20), cap))
    return pltpu.CompilerParams(dimension_semantics=dims, vmem_limit_bytes=vmem)


# ----------------------------------------------------------------------------
# Kernel 1 (small-C path): packed LHS @ block-diagonal weight -> one MXU pass.
# ----------------------------------------------------------------------------
def blockdiag_matmul_kernel(xh_ref, xw_ref, xz_ref, xc_ref, wbd_ref, y_ref,
                            lhs_sc):
    C = xh_ref.shape[-1]
    # Pack the four (tile, C) row views into one (tile, 4C) VMEM slab (cheap
    # in-VMEM masked stores), then a single (tile, 4C) x (4C, 4C) MXU pass.
    lhs_sc[:, 0 * C:1 * C] = xh_ref[...]
    lhs_sc[:, 1 * C:2 * C] = xw_ref[...]
    lhs_sc[:, 2 * C:3 * C] = xz_ref[...]
    lhs_sc[:, 3 * C:4 * C] = xc_ref[...]
    y_ref[...] = jnp.dot(lhs_sc[...], wbd_ref[...],
                         preferred_element_type=jnp.float32).astype(y_ref.dtype)


# ----------------------------------------------------------------------------
# Kernel 1 (large-C path): four dots, packed lane-dense output block.
# ----------------------------------------------------------------------------
def four_matmul_kernel(xh_ref, xw_ref, xz_ref, xc_ref,
                       whT_ref, wwT_ref, wcT_ref, y_ref):
    C = xh_ref.shape[-1]
    ww = wwT_ref[...]
    y_ref[:, 0 * C:1 * C] = jnp.dot(
        xh_ref[...], whT_ref[...],
        preferred_element_type=jnp.float32).astype(y_ref.dtype)
    y_ref[:, 1 * C:2 * C] = jnp.dot(
        xw_ref[...], ww,
        preferred_element_type=jnp.float32).astype(y_ref.dtype)
    # The PyTorch forward applies self.mlp_w (NOT self.mlp_z) to the z branch.
    y_ref[:, 2 * C:3 * C] = jnp.dot(
        xz_ref[...], ww,
        preferred_element_type=jnp.float32).astype(y_ref.dtype)
    y_ref[:, 3 * C:4 * C] = jnp.dot(
        xc_ref[...], wcT_ref[...],
        preferred_element_type=jnp.float32).astype(y_ref.dtype)


# ----------------------------------------------------------------------------
# Kernel 2: weighted branch combine + proj matmul (tiled over (B, P)).
# ----------------------------------------------------------------------------
def combine_kernel(h_ref, w_ref, z_ref, c_ref, a_ref,
                   projT_ref, projb_ref, o_ref):
    aw = a_ref[0]                                  # (4, C) softmax weights, f32
    mixed = (h_ref[0] * aw[0:1, :] + w_ref[0] * aw[1:2, :]
             + z_ref[0] * aw[2:3, :] + c_ref[0] * aw[3:4, :])     # f32 mix
    out = jnp.dot(mixed.astype(_COMPUTE_DTYPE), projT_ref[...],
                  preferred_element_type=jnp.float32) + projb_ref[...]
    o_ref[0] = out.astype(o_ref.dtype)


# ----------------------------------------------------------------------------
# Wrapper (glue: permutes / reshapes / parameter layout / tiling).
# ----------------------------------------------------------------------------
def weighted_permute_mlp(x, params, segment_dim):
    B, H, W, Z, C = x.shape
    assert H == W == Z == segment_dim, \
        "module's reshapes require H == W == Z == segment_dim"
    assert C % segment_dim == 0 and C % 3 == 0 and C % H == 0
    S = C // segment_dim
    T = C // H
    P = H * W * Z
    N = B * P
    cdt = _COMPUTE_DTYPE
    f32 = jnp.float32
    hp = jax.lax.Precision.HIGHEST
    cap = _vmem_cap()

    # ------------------------------------------------------------------
    # Reweight branch weights (tiny, pure XLA).  mean_spatial(h+w+z+c) is
    # computed from per-axis sums of x via linearity of the four projections,
    # so the branch tensors are never streamed from HBM a second time.
    # ------------------------------------------------------------------
    xs_h = jnp.sum(x, axis=(2, 3), dtype=f32)          # (B, H, C): sum over W,Z
    xs_w = jnp.sum(x, axis=(1, 3), dtype=f32)          # (B, W, C): sum over H,Z
    xs_z = jnp.sum(x, axis=(1, 2), dtype=f32)          # (B, Z, C): sum over H,W
    xs_all = jnp.sum(xs_h, axis=1)                     # (B, C)

    wh_f = params["mlp_h_w"].astype(f32)
    ww_f = params["mlp_w_w"].astype(f32)               # z branch reuses mlp_w
    wc_f = params["mlp_c_w"].astype(f32)
    whS = wh_f.reshape(H, T, C).sum(axis=0).reshape(T, H, S)
    wwS = ww_f.reshape(H, T, C).sum(axis=0).reshape(T, H, S)
    sum_h = jnp.einsum("tes,begs->bgt", whS, xs_h.reshape(B, H, segment_dim, S),
                       precision=hp).reshape(B, C)
    sum_w = jnp.einsum("tds,bdgs->bgt", wwS, xs_w.reshape(B, W, segment_dim, S),
                       precision=hp).reshape(B, C)
    sum_z = jnp.einsum("tas,bags->bgt", wwS, xs_z.reshape(B, Z, segment_dim, S),
                       precision=hp).reshape(B, C)
    sum_c = jnp.matmul(xs_all, wc_f.T, precision=hp)
    a_mean = (sum_h + sum_w + sum_z + sum_c) * (1.0 / float(P))       # (B, C)

    a1 = jnp.matmul(a_mean, params["fc1_w"].T, precision=hp) + params["fc1_b"]
    a1 = jax.nn.gelu(a1, approximate=False)
    logits = jnp.matmul(a1, params["fc2_w"].T, precision=hp) + params["fc2_b"]
    a_w = jnp.transpose(jax.nn.softmax(logits.reshape(B, C, 4), axis=-1),
                        (0, 2, 1)).astype(f32)                        # (B, 4, C)

    # ------------------------------------------------------------------
    # Kernel 1: four projections on the permuted (N, C) row views, packed
    # lane-dense (N, 4C) output.  bf16 cast is fused into the XLA permutes so
    # the relayouts move half the bytes.
    # ------------------------------------------------------------------
    xb = x.astype(cdt)
    x6 = xb.reshape(B, H, W, Z, segment_dim, S)
    xh = jnp.transpose(x6, (0, 4, 3, 2, 1, 5)).reshape(N, C)
    xw = jnp.transpose(x6, (0, 1, 4, 3, 2, 5)).reshape(N, C)
    xz = jnp.transpose(x6, (0, 2, 1, 4, 3, 5)).reshape(N, C)
    xc = xb.reshape(N, C)

    row_bytes = 4 * C * (2 + 2) * 2        # packed in + packed out, bf16, x2 bufs
    target_n = max(128, min(4096, (cap // 3) // row_bytes))
    if N >= 32:
        target_n = min(target_n, N // 2)   # >= 2 parallel steps (v7x megacore)
    tile_n = _pick_tile(N, target_n)
    n_tiles = N // tile_n

    use_blockdiag = (4 * C) <= 512
    spec_act = pl.BlockSpec((tile_n, C), lambda i: (i, 0))
    # TODO(synk): pl.Buffered(1) on the constant-index weight specs would halve
    # their VMEM; left at the default double-buffering for lowering safety.
    if use_blockdiag:
        # One MXU pass over a block-diagonal (4C, 4C) weight instead of four
        # skinny C-wide dots (C << 256 badly underfills the v6e/v7x MXU).
        wbd = jnp.zeros((4 * C, 4 * C), f32)
        wbd = wbd.at[0 * C:1 * C, 0 * C:1 * C].set(params["mlp_h_w"].T)
        wbd = wbd.at[1 * C:2 * C, 1 * C:2 * C].set(params["mlp_w_w"].T)
        wbd = wbd.at[2 * C:3 * C, 2 * C:3 * C].set(params["mlp_w_w"].T)  # z uses mlp_w
        wbd = wbd.at[3 * C:4 * C, 3 * C:4 * C].set(params["mlp_c_w"].T)
        weight_args = (wbd.astype(cdt),)
        weight_specs = [pl.BlockSpec((4 * C, 4 * C), lambda i: (0, 0))]
        scratch = [pltpu.VMEM((tile_n, 4 * C), cdt)]
        kern = blockdiag_matmul_kernel
        flops1 = 2 * N * (4 * C) * (4 * C)
        w_bytes = (4 * C) * (4 * C) * 2
    else:
        weight_args = (params["mlp_h_w"].T.astype(cdt),
                       params["mlp_w_w"].T.astype(cdt),
                       params["mlp_c_w"].T.astype(cdt))
        weight_specs = [pl.BlockSpec((C, C), lambda i: (0, 0))] * 3
        scratch = []
        kern = four_matmul_kernel
        flops1 = 2 * N * C * C * 4
        w_bytes = 3 * C * C * 2

    est1 = 2 * tile_n * 4 * C * (2 + 2) + 2 * w_bytes + tile_n * 4 * C * 6
    yall = pl.pallas_call(
        kern,
        out_shape=jax.ShapeDtypeStruct((N, 4 * C), cdt),
        grid=(n_tiles,),
        in_specs=[spec_act] * 4 + weight_specs,
        out_specs=pl.BlockSpec((tile_n, 4 * C), lambda i: (i, 0)),
        scratch_shapes=scratch,
        compiler_params=_mosaic_params(("parallel",), est1, cap),
        cost_estimate=pl.CostEstimate(
            flops=int(flops1), transcendentals=0,
            bytes_accessed=int(N * 4 * C * 2 * 2 + w_bytes)),
    )(xh, xw, xz, xc, *weight_args)

    # Inverse (literal) permutes back to spatial layout; the lane slices of the
    # packed slab fuse into the transpose reads.
    h_sp = (yall[:, 0 * C:1 * C].reshape(B, segment_dim, W, Z, H, T)
            .transpose(0, 4, 2, 3, 1, 5).reshape(B, P, C))
    w_sp = (yall[:, 1 * C:2 * C].reshape(B, H, segment_dim, Z, W, T)
            .transpose(0, 1, 4, 3, 2, 5).reshape(B, P, C))
    z_sp = (yall[:, 2 * C:3 * C].reshape(B, W, H, segment_dim, Z, T)
            .transpose(0, 2, 1, 4, 3, 5).reshape(B, P, C))
    c_sp = yall[:, 3 * C:4 * C].reshape(B, P, C)      # already spatial row order

    # ------------------------------------------------------------------
    # Kernel 2: weighted combine + proj, tiled over (B, P).
    # ------------------------------------------------------------------
    projT = params["proj_w"].T.astype(cdt)
    projb = params["proj_b"].reshape(1, C).astype(f32)

    row_bytes_b = C * (4 * 2 + 4) * 2      # 4 bf16 branch reads + f32 write, x2 bufs
    target_p = max(128, min(4096, (cap // 3) // row_bytes_b))
    if B == 1 and P >= 32:
        target_p = min(target_p, P // 2)   # keep >= 2 parallel steps when B == 1
    tile_p = _pick_tile(P, target_p)
    p_tiles = P // tile_p

    branch_spec = pl.BlockSpec((1, tile_p, C), lambda b, p: (b, p, 0))
    est_b = (2 * tile_p * C * (4 * 2 + 4)
             + 2 * (C * C * 2 + 4 * C * 4 + C * 4) + tile_p * C * 8)
    # NOTE: output stays f32 (module contract); a bf16 store + XLA upcast would
    # cost more total HBM traffic than the direct f32 store.
    out = pl.pallas_call(
        combine_kernel,
        out_shape=jax.ShapeDtypeStruct((B, P, C), f32),
        grid=(B, p_tiles),
        in_specs=[branch_spec] * 4 + [
            pl.BlockSpec((1, 4, C), lambda b, p: (b, 0, 0)),
            pl.BlockSpec((C, C), lambda b, p: (0, 0)),
            pl.BlockSpec((1, C), lambda b, p: (0, 0)),
        ],
        out_specs=pl.BlockSpec((1, tile_p, C), lambda b, p: (b, p, 0)),
        compiler_params=_mosaic_params(("parallel", "parallel"), est_b, cap),
        cost_estimate=pl.CostEstimate(
            flops=int(2 * B * P * C * C + 8 * B * P * C), transcendentals=0,
            bytes_accessed=int(4 * B * P * C * 2 + B * P * C * 4
                               + C * C * 2 + B * 4 * C * 4)),
    )(h_sp, w_sp, z_sp, c_sp, a_w, projT, projb)

    return out.reshape(B, H, W, Z, C)


# ----------------------------------------------------------------------------
# Pure-JAX reference (literal translation of the PyTorch forward, f32 highest).
# ----------------------------------------------------------------------------
def reference_forward(x, p, segment_dim):
    B, H, W, Z, C = x.shape
    S = C // segment_dim
    T = C // H
    hp = "highest"
    x6 = x.reshape(B, H, W, Z, segment_dim, S)
    h = jnp.transpose(x6, (0, 4, 3, 2, 1, 5)).reshape(B, segment_dim, W, Z, H * S)
    h = jnp.matmul(h, p["mlp_h_w"].T, precision=hp).reshape(B, segment_dim, W, Z, H, T)
    h = jnp.transpose(h, (0, 4, 2, 3, 1, 5)).reshape(B, H, W, Z, C)
    w_ = jnp.transpose(x6, (0, 1, 4, 3, 2, 5)).reshape(B, H, segment_dim, Z, W * S)
    w_ = jnp.matmul(w_, p["mlp_w_w"].T, precision=hp).reshape(B, H, segment_dim, Z, W, T)
    w_ = jnp.transpose(w_, (0, 1, 4, 3, 2, 5)).reshape(B, H, W, Z, C)
    z = jnp.transpose(x6, (0, 2, 1, 4, 3, 5)).reshape(B, W, H, segment_dim, Z * S)
    z = jnp.matmul(z, p["mlp_w_w"].T, precision=hp).reshape(B, W, H, segment_dim, Z, T)
    z = jnp.transpose(z, (0, 2, 1, 4, 3, 5)).reshape(B, H, W, Z, C)
    c = jnp.matmul(x, p["mlp_c_w"].T, precision=hp)
    a = jnp.mean(h + w_ + z + c, axis=(1, 2, 3))                    # (B, C)
    a = jnp.matmul(a, p["fc1_w"].T, precision=hp) + p["fc1_b"]
    a = jax.nn.gelu(a, approximate=False)
    a = jnp.matmul(a, p["fc2_w"].T, precision=hp) + p["fc2_b"]      # (B, 4C)
    a = a.reshape(B, C, 4).transpose(2, 0, 1)                       # (4, B, C)
    a = jax.nn.softmax(a, axis=0)[:, :, None, None, None, :]
    out = h * a[0] + w_ * a[1] + z * a[2] + c * a[3]
    out = jnp.matmul(out, p["proj_w"].T, precision=hp) + p["proj_b"]
    return out


# ----------------------------------------------------------------------------
if __name__ == "__main__":
    # Small shapes consistent with the module: H == W == Z == segment_dim.
    B = 2
    segment_dim = 4
    H = W = Z = segment_dim
    C = 48                       # dim (== codim), divisible by segment_dim and 3

    key = jax.random.PRNGKey(0)
    ks = jax.random.split(key, 10)

    def lin_w(k, out_f, in_f):
        return (jax.random.normal(k, (out_f, in_f), jnp.float32)
                / jnp.float32(math.sqrt(in_f)))

    # qkv_bias=False -> mlp_c/mlp_h/mlp_w have no bias; mlp_z exists but is unused.
    params = {
        "mlp_c_w": lin_w(ks[0], C, C),
        "mlp_h_w": lin_w(ks[1], C, C),
        "mlp_w_w": lin_w(ks[2], C, C),
        "fc1_w": lin_w(ks[3], C // 3, C),
        "fc1_b": 0.01 * jax.random.normal(ks[4], (C // 3,), jnp.float32),
        "fc2_w": lin_w(ks[5], 4 * C, C // 3),
        "fc2_b": 0.01 * jax.random.normal(ks[6], (4 * C,), jnp.float32),
        "proj_w": lin_w(ks[7], C, C),
        "proj_b": 0.01 * jax.random.normal(ks[8], (C,), jnp.float32),
    }

    x = jax.random.normal(ks[9], (B, H, W, Z, C), jnp.float32)

    fwd = jax.jit(weighted_permute_mlp, static_argnums=(2,))
    out = jax.block_until_ready(fwd(x, params, segment_dim))

    ref = jax.block_until_ready(reference_forward(x, params, segment_dim))
    # bf16 MXU operands (f32 accumulation) vs the f32 'highest' reference.
    np.testing.assert_allclose(np.asarray(out), np.asarray(ref),
                               rtol=2e-2, atol=2e-2)

    print("KERNEL_OK")
</pallas_src>

<mosaic_0001>
module attributes {stable_mosaic.version = 11 : i64} {
  func.func @blockdiag_matmul_kernel(%arg0: i32, %arg1: memref<64x48xbf16, #tpu.memory_space<vmem>>, %arg2: memref<64x48xbf16, #tpu.memory_space<vmem>>, %arg3: memref<64x48xbf16, #tpu.memory_space<vmem>>, %arg4: memref<64x48xbf16, #tpu.memory_space<vmem>>, %arg5: memref<192x192xbf16, #tpu.memory_space<vmem>>, %arg6: memref<64x192xbf16, #tpu.memory_space<vmem>>, %arg7: memref<64x192xbf16, #tpu.memory_space<vmem>>) attributes {dimension_semantics = [#tpu.dimension_semantics<parallel>], iteration_bounds = array<i64: 2>, scalar_prefetch = 0 : i64, scratch_operands = 1 : i64, tpu.core_type = #tpu.core_type<tc>, window_params = [{transform_indices = @transform_0, window_bounds = array<i64: 64, 48>}, {transform_indices = @transform_1, window_bounds = array<i64: 64, 48>}, {transform_indices = @transform_2, window_bounds = array<i64: 64, 48>}, {transform_indices = @transform_3, window_bounds = array<i64: 64, 48>}, {pipeline_mode = #tpu.pipeline_mode<synchronous>, transform_indices = @transform_4, window_bounds = array<i64: 192, 192>}, {transform_indices = @transform_5, window_bounds = array<i64: 64, 192>}]} {
    %c0 = arith.constant 0 : index
    %c0_0 = arith.constant 0 : index
    %0 = vector.load %arg1[%c0, %c0_0] : memref<64x48xbf16, #tpu.memory_space<vmem>>, vector<64x48xbf16>
    %c0_1 = arith.constant 0 : index
    %c0_2 = arith.constant 0 : index
    %1 = vector.load %arg7[%c0_1, %c0_2] : memref<64x192xbf16, #tpu.memory_space<vmem>>, vector<64x48xbf16>
    tpu.vector_store %arg7[%c0_1, %c0_2], %0 {strides = array<i32>} : memref<64x192xbf16, #tpu.memory_space<vmem>>, vector<64x48xbf16>,
    %c0_3 = arith.constant 0 : index
    %c0_4 = arith.constant 0 : index
    %2 = vector.load %arg2[%c0_3, %c0_4] : memref<64x48xbf16, #tpu.memory_space<vmem>>, vector<64x48xbf16>
    %c0_5 = arith.constant 0 : index
    %c48 = arith.constant 48 : index
    %3 = vector.load %arg7[%c0_5, %c48] : memref<64x192xbf16, #tpu.memory_space<vmem>>, vector<64x48xbf16>
    tpu.vector_store %arg7[%c0_5, %c48], %2 {strides = array<i32>} : memref<64x192xbf16, #tpu.memory_space<vmem>>, vector<64x48xbf16>,
    %c0_6 = arith.constant 0 : index
    %c0_7 = arith.constant 0 : index
    %4 = vector.load %arg3[%c0_6, %c0_7] : memref<64x48xbf16, #tpu.memory_space<vmem>>, vector<64x48xbf16>
    %c0_8 = arith.constant 0 : index
    %c96 = arith.constant 96 : index
    %5 = vector.load %arg7[%c0_8, %c96] : memref<64x192xbf16, #tpu.memory_space<vmem>>, vector<64x48xbf16>
    tpu.vector_store %arg7[%c0_8, %c96], %4 {strides = array<i32>} : memref<64x192xbf16, #tpu.memory_space<vmem>>, vector<64x48xbf16>,
    %c0_9 = arith.constant 0 : index
    %c0_10 = arith.constant 0 : index
    %6 = vector.load %arg4[%c0_9, %c0_10] : memref<64x48xbf16, #tpu.memory_space<vmem>>, vector<64x48xbf16>
    %c0_11 = arith.constant 0 : index
    %c144 = arith.constant 144 : index
    %7 = vector.load %arg7[%c0_11, %c144] : memref<64x192xbf16, #tpu.memory_space<vmem>>, vector<64x48xbf16>
    tpu.vector_store %arg7[%c0_11, %c144], %6 {strides = array<i32>} : memref<64x192xbf16, #tpu.memory_space<vmem>>, vector<64x48xbf16>,
    %c0_12 = arith.constant 0 : index
    %c0_13 = arith.constant 0 : index
    %8 = vector.load %arg7[%c0_12, %c0_13] : memref<64x192xbf16, #tpu.memory_space<vmem>>, vector<64x192xbf16>
    %c0_14 = arith.constant 0 : index
    %c0_15 = arith.constant 0 : index
    %9 = vector.load %arg5[%c0_14, %c0_15] : memref<192x192xbf16, #tpu.memory_space<vmem>>, vector<192x192xbf16>
    %cst = arith.constant dense<0.000000e+00> : vector<64x192xf32>
    %10 = tpu.matmul %8, %9, %cst {dimension_numbers = #tpu.dot_dimension_numbers<[1], [0], [0], [1], [0, 0, 1, 1], [], []>} : vector<64x192xbf16>, vector<192x192xbf16>, vector<64x192xf32> -> vector<64x192xf32>
    %11 = arith.truncf %10 : vector<64x192xf32> to vector<64x192xbf16>
    %c0_16 = arith.constant 0 : index
    %c0_17 = arith.constant 0 : index
    %12 = vector.load %arg6[%c0_16, %c0_17] : memref<64x192xbf16, #tpu.memory_space<vmem>>, vector<64x192xbf16>
    tpu.vector_store %arg6[%c0_16, %c0_17], %11 {strides = array<i32>} : memref<64x192xbf16, #tpu.memory_space<vmem>>, vector<64x192xbf16>,
    return
  }
  func.func @transform_0(%arg0: i32) -> (i32, i32) {
    %c0_i32 = arith.constant 0 : i32
    %c0_i32_0 = arith.constant 0 : i32
    return %arg0, %c0_i32 : i32, i32
  }
  func.func @transform_1(%arg0: i32) -> (i32, i32) {
    %c0_i32 = arith.constant 0 : i32
    %c0_i32_0 = arith.constant 0 : i32
    return %arg0, %c0_i32 : i32, i32
  }
  func.func @transform_2(%arg0: i32) -> (i32, i32) {
    %c0_i32 = arith.constant 0 : i32
    %c0_i32_0 = arith.constant 0 : i32
    return %arg0, %c0_i32 : i32, i32
  }
  func.func @transform_3(%arg0: i32) -> (i32, i32) {
    %c0_i32 = arith.constant 0 : i32
    %c0_i32_0 = arith.constant 0 : i32
    return %arg0, %c0_i32 : i32, i32
  }
  func.func @transform_4(%arg0: i32) -> (i32, i32) {
    %c0_i32 = arith.constant 0 : i32
    %c0_i32_0 = arith.constant 0 : i32
    %c0_i32_1 = arith.constant 0 : i32
    return %c0_i32, %c0_i32_0 : i32, i32
  }
  func.func @transform_5(%arg0: i32) -> (i32, i32) {
    %c0_i32 = arith.constant 0 : i32
    %c0_i32_0 = arith.constant 0 : i32
    return %arg0, %c0_i32 : i32, i32
  }
}

module attributes {stable_mosaic.version = 11 : i64} {
  func.func @combine_kernel(%arg0: i32, %arg1: i32, %arg2: memref<1x64x48xbf16, #tpu.memory_space<vmem>>, %arg3: memref<1x64x48xbf16, #tpu.memory_space<vmem>>, %arg4: memref<1x64x48xbf16, #tpu.memory_space<vmem>>, %arg5: memref<1x64x48xbf16, #tpu.memory_space<vmem>>, %arg6: memref<1x4x48xf32, #tpu.memory_space<vmem>>, %arg7: memref<48x48xbf16, #tpu.memory_space<vmem>>, %arg8: memref<1x48xf32, #tpu.memory_space<vmem>>, %arg9: memref<1x64x48xf32, #tpu.memory_space<vmem>>) attributes {dimension_semantics = [#tpu.dimension_semantics<parallel>, #tpu.dimension_semantics<parallel>], iteration_bounds = array<i64: 2, 1>, scalar_prefetch = 0 : i64, scratch_operands = 0 : i64, tpu.core_type = #tpu.core_type<tc>, window_params = [{transform_indices = @transform_0, window_bounds = array<i64: 1, 64, 48>}, {transform_indices = @transform_1, window_bounds = array<i64: 1, 64, 48>}, {transform_indices = @transform_2, window_bounds = array<i64: 1, 64, 48>}, {transform_indices = @transform_3, window_bounds = array<i64: 1, 64, 48>}, {transform_indices = @transform_4, window_bounds = array<i64: 1, 4, 48>}, {pipeline_mode = #tpu.pipeline_mode<synchronous>, transform_indices = @transform_5, window_bounds = array<i64: 48, 48>}, {pipeline_mode = #tpu.pipeline_mode<synchronous>, transform_indices = @transform_6, window_bounds = array<i64: 1, 48>}, {transform_indices = @transform_7, window_bounds = array<i64: 1, 64, 48>}]} {
    %c0 = arith.constant 0 : index
    %c0_0 = arith.constant 0 : index
    %c0_1 = arith.constant 0 : index
    %0 = vector.load %arg6[%c0, %c0_0, %c0_1] : memref<1x4x48xf32, #tpu.memory_space<vmem>>, vector<1x4x48xf32>
    %1 = vector.shape_cast %0 : vector<1x4x48xf32> to vector<4x48xf32>
    %c0_2 = arith.constant 0 : index
    %c0_3 = arith.constant 0 : index
    %c0_4 = arith.constant 0 : index
    %2 = vector.load %arg2[%c0_2, %c0_3, %c0_4] : memref<1x64x48xbf16, #tpu.memory_space<vmem>>, vector<1x64x48xbf16>
    %3 = vector.shape_cast %2 : vector<1x64x48xbf16> to vector<64x48xbf16>
    %4 = vector.extract_strided_slice %1 {offsets = [0, 0], sizes = [1, 48], strides = [1, 1]} : vector<4x48xf32> to vector<1x48xf32>
    %5 = arith.extf %3 : vector<64x48xbf16> to vector<64x48xf32>
    %6 = vector.broadcast %4 : vector<1x48xf32> to vector<64x48xf32>
    %7 = arith.mulf %5, %6 : vector<64x48xf32>
    %c0_5 = arith.constant 0 : index
    %c0_6 = arith.constant 0 : index
    %c0_7 = arith.constant 0 : index
    %8 = vector.load %arg3[%c0_5, %c0_6, %c0_7] : memref<1x64x48xbf16, #tpu.memory_space<vmem>>, vector<1x64x48xbf16>
    %9 = vector.shape_cast %8 : vector<1x64x48xbf16> to vector<64x48xbf16>
    %10 = vector.extract_strided_slice %1 {offsets = [1, 0], sizes = [1, 48], strides = [1, 1]} : vector<4x48xf32> to vector<1x48xf32>
    %11 = arith.extf %9 : vector<64x48xbf16> to vector<64x48xf32>
    %12 = vector.broadcast %10 : vector<1x48xf32> to vector<64x48xf32>
    %13 = arith.mulf %11, %12 : vector<64x48xf32>
    %14 = arith.addf %7, %13 : vector<64x48xf32>
    %c0_8 = arith.constant 0 : index
    %c0_9 = arith.constant 0 : index
    %c0_10 = arith.constant 0 : index
    %15 = vector.load %arg4[%c0_8, %c0_9, %c0_10] : memref<1x64x48xbf16, #tpu.memory_space<vmem>>, vector<1x64x48xbf16>
    %16 = vector.shape_cast %15 : vector<1x64x48xbf16> to vector<64x48xbf16>
    %17 = vector.extract_strided_slice %1 {offsets = [2, 0], sizes = [1, 48], strides = [1, 1]} : vector<4x48xf32> to vector<1x48xf32>
    %18 = arith.extf %16 : vector<64x48xbf16> to vector<64x48xf32>
    %19 = vector.broadcast %17 : vector<1x48xf32> to vector<64x48xf32>
    %20 = arith.mulf %18, %19 : vector<64x48xf32>
    %21 = arith.addf %14, %20 : vector<64x48xf32>
    %c0_11 = arith.constant 0 : index
    %c0_12 = arith.constant 0 : index
    %c0_13 = arith.constant 0 : index
    %22 = vector.load %arg5[%c0_11, %c0_12, %c0_13] : memref<1x64x48xbf16, #tpu.memory_space<vmem>>, vector<1x64x48xbf16>
    %23 = vector.shape_cast %22 : vector<1x64x48xbf16> to vector<64x48xbf16>
    %24 = vector.extract_strided_slice %1 {offsets = [3, 0], sizes = [1, 48], strides = [1, 1]} : vector<4x48xf32> to vector<1x48xf32>
    %25 = arith.extf %23 : vector<64x48xbf16> to vector<64x48xf32>
    %26 = vector.broadcast %24 : vector<1x48xf32> to vector<64x48xf32>
    %27 = arith.mulf %25, %26 : vector<64x48xf32>
    %28 = arith.addf %21, %27 : vector<64x48xf32>
    %29 = arith.truncf %28 : vector<64x48xf32> to vector<64x48xbf16>
    %c0_14 = arith.constant 0 : index
    %c0_15 = arith.constant 0 : index
    %30 = vector.load %arg7[%c0_14, %c0_15] : memref<48x48xbf16, #tpu.memory_space<vmem>>, vector<48x48xbf16>
    %cst = arith.constant dense<0.000000e+00> : vector<64x48xf32>
    %31 = tpu.matmul %29, %30, %cst {dimension_numbers = #tpu.dot_dimension_numbers<[1], [0], [0], [1], [0, 0, 1, 1], [], []>} : vector<64x48xbf16>, vector<48x48xbf16>, vector<64x48xf32> -> vector<64x48xf32>
    %c0_16 = arith.constant 0 : index
    %c0_17 = arith.constant 0 : index
    %32 = vector.load %arg8[%c0_16, %c0_17] : memref<1x48xf32, #tpu.memory_space<vmem>>, vector<1x48xf32>
    %33 = vector.broadcast %32 : vector<1x48xf32> to vector<64x48xf32>
    %34 = arith.addf %31, %33 : vector<64x48xf32>
    %c0_18 = arith.constant 0 : index
    %c0_19 = arith.constant 0 : index
    %c0_20 = arith.constant 0 : index
    %35 = vector.load %arg9[%c0_18, %c0_19, %c0_20] : memref<1x64x48xf32, #tpu.memory_space<vmem>>, vector<1x64x48xf32>
    %36 = vector.shape_cast %35 : vector<1x64x48xf32> to vector<64x48xf32>
    %37 = vector.shape_cast %34 : vector<64x48xf32> to vector<1x64x48xf32>
    tpu.vector_store %arg9[%c0_18, %c0_19, %c0_20], %37 {strides = array<i32>} : memref<1x64x48xf32, #tpu.memory_space<vmem>>, vector<1x64x48xf32>,
    return
  }
  func.func @transform_0(%arg0: i32, %arg1: i32) -> (i32, i32, i32) {
    %c0_i32 = arith.constant 0 : i32
    %c0_i32_0 = arith.constant 0 : i32
    return %arg0, %arg1, %c0_i32 : i32, i32, i32
  }
  func.func @transform_1(%arg0: i32, %arg1: i32) -> (i32, i32, i32) {
    %c0_i32 = arith.constant 0 : i32
    %c0_i32_0 = arith.constant 0 : i32
    return %arg0, %arg1, %c0_i32 : i32, i32, i32
  }
  func.func @transform_2(%arg0: i32, %arg1: i32) -> (i32, i32, i32) {
    %c0_i32 = arith.constant 0 : i32
    %c0_i32_0 = arith.constant 0 : i32
    return %arg0, %arg1, %c0_i32 : i32, i32, i32
  }
  func.func @transform_3(%arg0: i32, %arg1: i32) -> (i32, i32, i32) {
    %c0_i32 = arith.constant 0 : i32
    %c0_i32_0 = arith.constant 0 : i32
    return %arg0, %arg1, %c0_i32 : i32, i32, i32
  }
  func.func @transform_4(%arg0: i32, %arg1: i32) -> (i32, i32, i32) {
    %c0_i32 = arith.constant 0 : i32
    %c0_i32_0 = arith.constant 0 : i32
    %c0_i32_1 = arith.constant 0 : i32
    return %arg0, %c0_i32, %c0_i32_0 : i32, i32, i32
  }
  func.func @transform_5(%arg0: i32, %arg1: i32) -> (i32, i32) {
    %c0_i32 = arith.constant 0 : i32
    %c0_i32_0 = arith.constant 0 : i32
    %c0_i32_1 = arith.constant 0 : i32
    return %c0_i32, %c0_i32_0 : i32, i32
  }
  func.func @transform_6(%arg0: i32, %arg1: i32) -> (i32, i32) {
    %c0_i32 = arith.constant 0 : i32
    %c0_i32_0 = arith.constant 0 : i32
    %c0_i32_1 = arith.constant 0 : i32
    return %c0_i32, %c0_i32_0 : i32, i32
  }
  func.func @transform_7(%arg0: i32, %arg1: i32) -> (i32, i32, i32) {
    %c0_i32 = arith.constant 0 : i32
    %c0_i32_0 = arith.constant 0 : i32
    return %arg0, %arg1, %c0_i32 : i32, i32, i32
  }
}

</mosaic_0001>

<bundles_post_ra>
// kernel: weighted_permute_mlp.2
= control target key start
LH: loop header
LB: loop body
LE: loop exit
PB: predicated region body
PF: predicated region fallthrough
CT: control target
= control target key end

     0   :  { %s1149_s18 = smov 0   ;;  %s1486_s0 = inlined_call_operand.vmem [shape: bf16[128,48], index: 0, kind: input, shape index: {}]   ;;  %s1487_s1 = inlined_call_operand.vmem [shape: bf16[128,48], index: 1, kind: input, shape index: {}]   ;;  %s1488_s2 = inlined_call_operand.vmem [shape: bf16[128,48], index: 2, kind: input, shape index: {}]   ;;  %s1489_s3 = inlined_call_operand.vmem [shape: bf16[128,48], index: 3, kind: input, shape index: {}]   ;;  %s1490_s4 = inlined_call_operand.vmem [shape: bf16[192,192], index: 4, kind: input, shape index: {}]   ;;  %s1491_s5 = inlined_call_operand.vmem [shape: bf16[128,192], index: 5, kind: output, shape index: {}]  }
   0x1 LB: > { %s910_s19 = sadd.s32 4294967295, %s1114_s18   ;;  %p914_p0 = scmp.ge.s32.totalorder %s1114_s18, 1  ;;  %s1114_s18 = sphi %s1149_s18, %s15_s18  }
   0x2   : > { %p221_p1 = scmp.lt.s32.totalorder %s1114_s18, 3 }
   0x4   : > { %p222_p2 = pnand %p914_p0, %p221_p1 }
   0x5   : > { %s915_s20 = sshll.u32 (!%p222_p2), %s910_s19, 3  ;;  %s1116_s6 = smov (!%p222_p2), 96  }
   0x6   : > { %225 = sbr.rel (%p222_p2) target bundleno = 345 (0x159), region = 40  ;;  %p266_p3 = scmp.lt.s32.totalorder (!%p222_p2), %s915_s20, 15 }
   0x7   : > { %s1117_s7 = smov (!%p222_p2), 48   ;;  %s1118_s8 = smov (!%p222_p2), 16  }
   0xb   : > { %s1497_s20 = smov (!%p266_p3, %s915_s20), 15  ;;  %v1016_v12 = vld [vmem:[%s1490_s4 + $0x70] sm:$0xf]  ;;  %v1088_v13 = vld [vmem:[%s1490_s4 + $0x74] sm:$0xf0]  ;;  %vm305_vm0 = vcmask 388096  }
   0xc   : > { %s1160_s21 = sshll.u32 %s1497_s20, 2  ;;  %v1087_v14 = vld [vmem:[%s1490_s4 + $0x74] sm:$0xf]  ;;  %v1017_v15 = vor.u32 %v1088_v13, %v1016_v12  ;;  %v1018_v16 = vld [vmem:[%s1490_s4 + $0x78] sm:$0xf0]  ;;  %vm354_vm1 = vcmask 781696  }
   0xd   : > { %s1166_s24 = scalar_lea.vmem %s1488_s2, %s1160_s21  ;;  %s1172_s27 = scalar_lea.vmem %s1487_s1, %s1160_s21  ;;  %v1008_v17 = vld [vmem:[%s1490_s4 + $0x60] sm:$0xf]  ;;  %v1086_v18 = vld [vmem:[%s1490_s4 + $0x64] sm:$0xf0]  ;;  %v1021_v19 = vor.u32 %v1087_v14, %v1018_v16  ;;  %v1085_v20 = vld [vmem:[%s1490_s4 + $0x64] sm:$0xf] }
   0xe   : > { %v363_v0 = vld [vmem:[%s1166_s24] sm:$0xf]  ;;  %s1180_s30 = scalar_lea.vmem %s1489_s3, %s1160_s21  ;;  %v364_v3 = vld [vmem:[%s1166_s24 + $0x4] sm:$0xf]  ;;  %v365_v6 = vld [vmem:[%s1166_s24 + $0x8] sm:$0xf]  ;;  %681 = vmatpush.bf16.msra.mxu0 %v1017_v15  ;;  %v1009_v24 = vor.u32 %v1086_v18, %v1008_v17 }
   0xf   : > { %v314_v1 = vld [vmem:[%s1172_s27] sm:$0xf]  ;;  %379 = vrot.lane.b32.xlu0 %v363_v0, %s1116_s6  ;;  %v315_v4 = vld [vmem:[%s1172_s27 + $0x4] sm:$0xf]  ;;  %v366_v7 = vld [vmem:[%s1166_s24 + $0xc] sm:$0xf]  ;;  %739 = vmatpush.bf16.msra.mxu2 %v1021_v19 }
  0x10   : > { %330 = vrot.lane.b32.xlu1 %v314_v1, %s1117_s7  ;;  %v431_v2 = vld [vmem:[%s1180_s30] sm:$0xf]  ;;  %v432_v5 = vld [vmem:[%s1180_s30 + $0x4] sm:$0xf]  ;;  %v316_v8 = vld [vmem:[%s1172_s27 + $0x8] sm:$0xf] }
  0x11   : > { %447 = vrot.lane.b32.xlu2 %v431_v2, %s1118_s8  ;;  %v317_v9 = vld [vmem:[%s1172_s27 + $0xc] sm:$0xf]  ;;  %v433_v10 = vld [vmem:[%s1180_s30 + $0x8] sm:$0xf]  ;;  %v367_v22 = vld [vmem:[%s1166_s24 + $0x10] sm:$0xf] }
  0x12   : > { %v434_v11 = vld [vmem:[%s1180_s30 + $0xc] sm:$0xf]  ;;  %v368_v23 = vld [vmem:[%s1166_s24 + $0x14] sm:$0xf]  ;;  %v1000_v26 = vld [vmem:[%s1490_s4 + $0x50] sm:$0xf]  ;;  %682 = vmatpush.bf16.msra.mxu0 %v1009_v24 }
  0x13   : > { %v1010_v21 = vld [vmem:[%s1490_s4 + $0x68] sm:$0xf0]  ;;  %v1084_v27 = vld [vmem:[%s1490_s4 + $0x54] sm:$0xf0]  ;;  %v318_v28 = vld [vmem:[%s1172_s27 + $0x10] sm:$0xf] }
  0x14   : > { %v1013_v25 = vor.u32 %v1085_v20, %v1010_v21  ;;  %v1083_v29 = vld [vmem:[%s1490_s4 + $0x54] sm:$0xf]  ;;  %v1002_v30 = vld [vmem:[%s1490_s4 + $0x58] sm:$0xf0]  ;;  %v1001_v31 = vor.u32 %v1084_v27, %v1000_v26  ;;  %v435_v34 = vld [vmem:[%s1180_s30 + $0x10] sm:$0xf] }
  0x15   : > { %v1005_v32 = vor.u32 %v1083_v29, %v1002_v30  ;;  %v319_v33 = vld [vmem:[%s1172_s27 + $0x14] sm:$0xf]  ;;  %v369_v36 = vld [vmem:[%s1166_s24 + $0x18] sm:$0xf]  ;;  %v370_v37 = vld [vmem:[%s1166_s24 + $0x1c] sm:$0xf]  ;;  %s1268_s24 = scalar_lea.vmem %s1486_s0, %s1160_s21 }
  0x16   : > { %740 = vmatpush.bf16.msra.mxu2 %v1013_v25  ;;  %683 = vmatpush.bf16.msra.mxu0 %v1001_v31  ;;  %v436_v35 = vld [vmem:[%s1180_s30 + $0x14] sm:$0xf]  ;;  %v320_v38 = vld [vmem:[%s1172_s27 + $0x18] sm:$0xf]  ;;  %v321_v39 = vld [vmem:[%s1172_s27 + $0x1c] sm:$0xf] }
  0x17   : > { %381 = vrot.lane.b32.xlu0 %v364_v3, %s1116_s6  ;;  %v437_v40 = vld [vmem:[%s1180_s30 + $0x18] sm:$0xf]  ;;  %v438_v41 = vld [vmem:[%s1180_s30 + $0x1c] sm:$0xf]  ;;  %v992_v42 = vld [vmem:[%s1490_s4 + $0x40] sm:$0xf] }
  0x18   : > { %332 = vrot.lane.b32.xlu1 %v315_v4, %s1117_s7  ;;  %v1082_v43 = vld [vmem:[%s1490_s4 + $0x44] sm:$0xf0]  ;;  %v1081_v44 = vld [vmem:[%s1490_s4 + $0x44] sm:$0xf]  ;;  %v297_v45 = vld [vmem:[%s1268_s24] sm:$0xf] }
  0x19   : > { %449 = vrot.lane.b32.xlu2 %v432_v5, %s1118_s8  ;;  %v993_v46 = vor.u32 %v1082_v43, %v992_v42  ;;  %v994_v47 = vld [vmem:[%s1490_s4 + $0x48] sm:$0xf0]  ;;  %306 = vst.msk [vmem:[#allocation2] sm:$0xf] %vm305_vm0, %v297_v45  ;;  %v984_v49 = vld [vmem:[%s1490_s4 + $0x30] sm:$0xf] }
  0x1a   : > { %741 = vmatpush.bf16.msra.mxu2 %v1005_v32  ;;  %v997_v48 = vor.u32 %v1081_v44, %v994_v47  ;;  %v1080_v50 = vld [vmem:[%s1490_s4 + $0x34] sm:$0xf0]  ;;  %v1079_v51 = vld [vmem:[%s1490_s4 + $0x34] sm:$0xf]  ;;  %v986_v53 = vld [vmem:[%s1490_s4 + $0x38] sm:$0xf0] }
  0x1b   : > { %684 = vmatpush.bf16.msra.mxu0 %v993_v46  ;;  %v985_v52 = vor.u32 %v1080_v50, %v984_v49  ;;  %v1048_v54 = vld [vmem:[%s1490_s4 + $0xb0] sm:$0xf]  ;;  %v1096_v55 = vld [vmem:[%s1490_s4 + $0xb4] sm:$0xf0]  ;;  %v989_v56 = vor.u32 %v1079_v51, %v986_v53  ;;  %v1095_v58 = vld [vmem:[%s1490_s4 + $0xb4] sm:$0xf] }
  0x1c   : > { %v1049_v57 = vor.u32 %v1096_v55, %v1048_v54  ;;  %v1050_v59 = vld [vmem:[%s1490_s4 + $0xb8] sm:$0xf0]  ;;  %v976_v61 = vld [vmem:[%s1490_s4 + $0x20] sm:$0xf]  ;;  %v1078_v62 = vld [vmem:[%s1490_s4 + $0x24] sm:$0xf0] }
  0x1d   : > { %v1053_v60 = vor.u32 %v1095_v58, %v1050_v59  ;;  %v1077_v63 = vld [vmem:[%s1490_s4 + $0x24] sm:$0xf]  ;;  %v977_v1 = vor.u32 %v1078_v62, %v976_v61  ;;  %v978_v2 = vld [vmem:[%s1490_s4 + $0x28] sm:$0xf0]  ;;  %v1040_v3 = vld [vmem:[%s1490_s4 + $0xa0] sm:$0xf] }
  0x1e   : > { %742 = vmatpush.bf16.msra.mxu2 %v997_v48  ;;  %714 = vmatpush.bf16.msra.mxu1 %v1049_v57  ;;  %v298_v0 = vld [vmem:[%s1268_s24 + $0x4] sm:$0xf]  ;;  %v981_v5 = vor.u32 %v1077_v63, %v978_v2  ;;  %v1076_v12 = vld [vmem:[%s1490_s4 + $0x14] sm:$0xf0]  ;;  %v1075_v13 = vld [vmem:[%s1490_s4 + $0x14] sm:$0xf] }
  0x1f   : > { %383 = vrot.lane.b32.xlu0 %v365_v6, %s1116_s6  ;;  %685 = vmatpush.bf16.msra.mxu0 %v985_v52  ;;  %307 = vst.msk [vmem:[#allocation2 + $0x8] sm:$0xf] %vm305_vm0, %v298_v0  ;;  %v1094_v6 = vld [vmem:[%s1490_s4 + $0xa4] sm:$0xf0]  ;;  %v970_v15 = vld [vmem:[%s1490_s4 + $0x18] sm:$0xf0] }
  0x20   : > { %385 = vrot.lane.b32.xlu1 %v366_v7, %s1116_s6  ;;  %772 = vmatpush.bf16.msra.mxu3 %v1053_v60  ;;  %v1093_v7 = vld [vmem:[%s1490_s4 + $0xa4] sm:$0xf]  ;;  %v1032_v16 = vld [vmem:[%s1490_s4 + $0x90] sm:$0xf]  ;;  %v1092_v17 = vld [vmem:[%s1490_s4 + $0x94] sm:$0xf0]  ;;  %v973_v18 = vor.u32 %v1075_v13, %v970_v15 }
  0x21   : > { %334 = vrot.lane.b32.xlu2 %v316_v8, %s1117_s7  ;;  %v1041_v8 = vor.u32 %v1094_v6, %v1040_v3  ;;  %v1033_v19 = vor.u32 %v1092_v17, %v1032_v16  ;;  %v1091_v20 = vld [vmem:[%s1490_s4 + $0x94] sm:$0xf]  ;;  %v1034_v21 = vld [vmem:[%s1490_s4 + $0x98] sm:$0xf0]  ;;  %v1074_v24 = vld [vmem:[%s1490_s4 + $0x4] sm:$0xf0] }
  0x22   : > { %743 = vmatpush.bf16.msra.mxu2 %v989_v56  ;;  %v1073_v25 = vld [vmem:[%s1490_s4 + $0x4] sm:$0xf]  ;;  %v299_v26 = vld [vmem:[%s1268_s24 + $0x8] sm:$0xf]  ;;  %v1024_v29 = vld [vmem:[%s1490_s4 + $0x80] sm:$0xf] }
  0x23   : > { %686 = vmatpush.bf16.msra.mxu0 %v977_v1  ;;  %715 = vmatpush.bf16.msra.mxu1 %v1041_v8  ;;  %308 = vst.msk [vmem:[#allocation2 + $0x10] sm:$0xf] %vm305_vm0, %v299_v26  ;;  %v1090_v32 = vld [vmem:[%s1490_s4 + $0x84] sm:$0xf0]  ;;  %vm420_vm2 = vcmask 1044224   ;;  %vm421_vm3 = vcmask 130052  }
  0x24   : > { %vm403_vm4 = vcmask 785408   ;;  %vm1389_vm5 = vmor %vm421_vm3, %vm420_vm2  ;;  %v301_v43 = vld [vmem:[%s1268_s24 + $0x10] sm:$0xf]  ;;  %vm471_vm6 = vcmask 519296   ;;  %v302_v46 = vld [vmem:[%s1268_s24 + $0x14] sm:$0xf] }
  0x25   : > { %310 = vst.msk [vmem:[#allocation2 + $0x20] sm:$0xf] %vm305_vm0, %v301_v43  ;;  %v303_v55 = vld [vmem:[%s1268_s24 + $0x18] sm:$0xf]  ;;  %vm668_vm7 = vcmask 523264   ;;  %vm805_vm8 = vcmask 1043456  }
  0x26   : > { %744 = vmatpush.bf16.msra.mxu2 %v981_v5  ;;  %311 = vst.msk [vmem:[#allocation2 + $0x28] sm:$0xf] %vm305_vm0, %v302_v46  ;;  %v304_v1 = vld [vmem:[%s1268_s24 + $0x1c] sm:$0xf]  ;;  %vm806_vm9 = vcmask 523268  }
  0x27   : > { %336 = vrot.lane.b32.xlu0 %v317_v9, %s1117_s7  ;;  %v1042_v9 = vld [vmem:[%s1490_s4 + $0xa8] sm:$0xf0]  ;;  %716 = vmatpush.bf16.msra.mxu1 %v1033_v19  ;;  %312 = vst.msk [vmem:[#allocation2 + $0x30] sm:$0xf] %vm305_vm0, %v303_v55  ;;  %vm1455_vm10 = vmor %vm806_vm9, %vm805_vm8 }
  0x28   : > { %451 = vrot.lane.b32.xlu1 %v433_v10, %s1118_s8  ;;  %v1045_v10 = vor.u32 %v1093_v7, %v1042_v9  ;;  %313 = vst.msk [vmem:[#allocation2 + $0x38] sm:$0xf] %vm305_vm0, %v304_v1 }
  0x29   : > { %453 = vrot.lane.b32.xlu2 %v434_v11, %s1118_s8  ;;  %v968_v11 = vld [vmem:[%s1490_s4 + $0x10] sm:$0xf] }
  0x2a   : > { %v969_v14 = vor.u32 %v1076_v12, %v968_v11  ;;  %773 = vmatpush.bf16.msra.mxu3 %v1045_v10  ;;  %745 = vmatpush.bf16.msra.mxu2 %v973_v18 }
  0x2c   : > { %687 = vmatpush.bf16.msra.mxu0 %v969_v14 }
  0x2f   : > { %387 = vrot.lane.b32.xlu0 %v367_v22, %s1116_s6  ;;  %v1037_v22 = vor.u32 %v1091_v20, %v1034_v21 }
  0x30   : > { %389 = vrot.lane.b32.xlu1 %v368_v23, %s1116_s6  ;;  %v960_v23 = vld [vmem:[%s1490_s4] sm:$0xf] }
  0x31   : > { %338 = vrot.lane.b32.xlu2 %v318_v28, %s1117_s7  ;;  %v961_v27 = vor.u32 %v1074_v24, %v960_v23  ;;  %v962_v28 = vld [vmem:[%s1490_s4 + $0x8] sm:$0xf0]  ;;  %774 = vmatpush.bf16.msra.mxu3 %v1037_v22 }
  0x32   : > { %v965_v31 = vor.u32 %v1073_v25, %v962_v28 }
  0x33   : > { %688 = vmatpush.bf16.msra.mxu0 %v961_v27 }
  0x34   : > { %746 = vmatpush.bf16.msra.mxu2 %v965_v31 }
  0x37   : > { %340 = vrot.lane.b32.xlu0 %v319_v33, %s1117_s7  ;;  %v1089_v33 = vld [vmem:[%s1490_s4 + $0x84] sm:$0xf] }
  0x38   : > { %455 = vrot.lane.b32.xlu1 %v435_v34, %s1118_s8  ;;  %v1025_v34 = vor.u32 %v1090_v32, %v1024_v29 }
  0x39   : > { %457 = vrot.lane.b32.xlu2 %v436_v35, %s1118_s8  ;;  %v1026_v35 = vld [vmem:[%s1490_s4 + $0x88] sm:$0xf0] }
  0x3a   : > { %717 = vmatpush.bf16.msra.mxu1 %v1025_v34 }
  0x3f   : > { %391 = vrot.lane.b32.xlu0 %v369_v36, %s1116_s6  ;;  %v1029_v36 = vor.u32 %v1089_v33, %v1026_v35 }
  0x40   : > { %393 = vrot.lane.b32.xlu1 %v370_v37, %s1116_s6  ;;  %v300_v37 = vld [vmem:[%s1268_s24 + $0xc] sm:$0xf]  ;;  %s1064_s24 = sshll.u32 %s1497_s20, 3 }
  0x41   : > { %342 = vrot.lane.b32.xlu2 %v320_v38, %s1117_s7  ;;  %775 = vmatpush.bf16.msra.mxu3 %v1029_v36  ;;  %309 = vst.msk [vmem:[#allocation2 + $0x18] sm:$0xf] %vm305_vm0, %v300_v37  ;;  %s1453_s21 = scalar_lea.vmem %s1491_s5, %s1064_s24 }
  0x47   : > { %344 = vrot.lane.b32.xlu0 %v321_v39, %s1117_s7 }
  0x48   : > { %459 = vrot.lane.b32.xlu1 %v437_v40, %s1118_s8 }
  0x49   : > { %461 = vrot.lane.b32.xlu2 %v438_v41, %s1118_s8 }
  0x6b   : > { %v1324_v4 = vpop.permute.xlu2 %447 }
  0x73   : > { %v450_v30 = vpop.permute.xlu2 %449 }
  0x7b   : > { %v335_v38 = vpop.permute.xlu2 %334 }
  0x7c   : > { %357 = vst.msk [vmem:[#allocation2 + $0x10] sm:$0xf] %vm354_vm1, %v335_v38 }
  0x81   : > { %v380_v39 = vpop.permute.xlu0 %379 }
  0x82   : > { %v331_v40 = vpop.permute.xlu1 %330  ;;  %v395_v41 = vrot.slane %v380_v39, 4 }
  0x83   : > { %355 = vst.msk [vmem:[#allocation2] sm:$0xf] %vm354_vm1, %v331_v40  ;;  %v454_v44 = vpop.permute.xlu2 %453 }
  0x84   : > { %v404_v45 = vsel %vm403_vm4, %v395_v41, %v380_v39 }
  0x85   : > { %423 = vst.msk [vmem:[#allocation2] sm:$0xff] %vm1389_vm5, %v404_v45 }
  0x86   : > { %472 = vst.msk [vmem:[#allocation2 + $0x4] sm:$0xf] %vm471_vm6, %v1324_v4 }
  0x89   : > { %v382_v47 = vpop.permute.xlu0 %381 }
  0x8a   : > { %v333_v48 = vpop.permute.xlu1 %332  ;;  %v396_v49 = vrot.slane %v382_v47, 4 }
  0x8b   : > { %356 = vst.msk [vmem:[#allocation2 + $0x8] sm:$0xf] %vm354_vm1, %v333_v48  ;;  %v339_v50 = vpop.permute.xlu2 %338 }
  0x8c   : > { %v405_v51 = vsel %vm403_vm4, %v396_v49, %v382_v47  ;;  %359 = vst.msk [vmem:[#allocation2 + $0x20] sm:$0xf] %vm354_vm1, %v339_v50  ;;  %v928_v58 = vld [vmem:[#allocation2] sm:$0xf] }
  0x8d   : > { %424 = vst.msk [vmem:[#allocation2 + $0x8] sm:$0xff] %vm1389_vm5, %v405_v51  ;;  %v1065_v61 = vld [vmem:[#allocation2 + $0x4] sm:$0xf] }
  0x8e   : > { %473 = vst.msk [vmem:[#allocation2 + $0xc] sm:$0xf] %vm471_vm6, %v450_v30 }
  0x91   : > { %v384_v52 = vpop.permute.xlu0 %383 }
  0x92   : > { %v386_v53 = vpop.permute.xlu1 %385  ;;  %v397_v54 = vrot.slane %v384_v52, 4 }
  0x93   : > { %v458_v56 = vpop.permute.xlu2 %457  ;;  %v398_v63 = vrot.slane %v386_v53, 4 }
  0x94   : > { %v406_v57 = vsel %vm403_vm4, %v397_v54, %v384_v52  ;;  %v1066_v59 = vld [vmem:[#allocation2 + $0x4] sm:$0xf0] }
  0x95   : > { %425 = vst.msk [vmem:[#allocation2 + $0x10] sm:$0xff] %vm1389_vm5, %v406_v57  ;;  %v929_v60 = vor.u32 %v1066_v59, %v928_v58  ;;  %v930_v62 = vld [vmem:[#allocation2 + $0x8] sm:$0xf0]  ;;  %v407_v4 = vsel %vm403_vm4, %v398_v63, %v386_v53 }
  0x96   : > { %v933_v0 = vor.u32 %v1065_v61, %v930_v62 }
  0x97   : > { %689 = vmatmul.bf16.vlgmr.msra.gmra.mxu0 %v929_v60  ;;  %747 = vmatmul.bf16.vlgmr.msra.gmra.mxu2 %v929_v60 }
  0x98   : > { %1054 = vmatmul.msk.bf16.vlgmr.msra.gmra.mxu1 %vm668_vm7, %v933_v0  ;;  %1058 = vmatmul.msk.bf16.vlgmr.msra.gmra.mxu3 %vm668_vm7, %v933_v0 }
  0x99   : > { %v337_v2 = vpop.permute.xlu0 %336 }
  0x9a   : > { %v452_v3 = vpop.permute.xlu1 %451  ;;  %358 = vst.msk [vmem:[#allocation2 + $0x18] sm:$0xf] %vm354_vm1, %v337_v2 }
  0x9b   : > { %426 = vst.msk [vmem:[#allocation2 + $0x18] sm:$0xff] %vm1389_vm5, %v407_v4  ;;  %v343_v5 = vpop.permute.xlu2 %342 }
  0x9c   : > { %475 = vst.msk [vmem:[#allocation2 + $0x1c] sm:$0xf] %vm471_vm6, %v454_v44  ;;  %v936_v12 = vld [vmem:[#allocation2 + $0x10] sm:$0xf] }
  0x9d   : > { %474 = vst.msk [vmem:[#allocation2 + $0x14] sm:$0xf] %vm471_vm6, %v452_v3 }
  0x9e   : > { %361 = vst.msk [vmem:[#allocation2 + $0x30] sm:$0xf] %vm354_vm1, %v343_v5 }
  0xa1   : > { %v388_v6 = vpop.permute.xlu0 %387 }
  0xa2   : > { %v390_v7 = vpop.permute.xlu1 %389  ;;  %v399_v8 = vrot.slane %v388_v6, 4  ;;  %v1068_v9 = vld [vmem:[#allocation2 + $0x14] sm:$0xf0] }
  0xa3   : > { %v938_v10 = vld [vmem:[#allocation2 + $0x18] sm:$0xf0]  ;;  %v937_v14 = vor.u32 %v1068_v9, %v936_v12  ;;  %v400_v16 = vrot.slane %v390_v7, 4  ;;  %v462_v32 = vpop.permute.xlu2 %461 }
  0xa4   : > { %v408_v11 = vsel %vm403_vm4, %v399_v8, %v388_v6  ;;  %v1067_v13 = vld [vmem:[#allocation2 + $0x14] sm:$0xf] }
  0xa5   : > { %427 = vst.msk [vmem:[#allocation2 + $0x20] sm:$0xff] %vm1389_vm5, %v408_v11  ;;  %v941_v15 = vor.u32 %v1067_v13, %v938_v10  ;;  %v409_v19 = vsel %vm403_vm4, %v400_v16, %v390_v7 }
  0xa7   : > { %694 = vmatmul.bf16.gmra.mxu0 %v937_v14  ;;  %752 = vmatmul.bf16.gmra.mxu2 %v937_v14 }
  0xa8   : > { %1055 = vmatmul.msk.bf16.gmra.mxu1 %vm668_vm7, %v941_v15  ;;  %1059 = vmatmul.msk.bf16.gmra.mxu3 %vm668_vm7, %v941_v15 }
  0xa9   : > { %v341_v17 = vpop.permute.xlu0 %340 }
  0xaa   : > { %v456_v18 = vpop.permute.xlu1 %455  ;;  %360 = vst.msk [vmem:[#allocation2 + $0x28] sm:$0xf] %vm354_vm1, %v341_v17 }
  0xab   : > { %428 = vst.msk [vmem:[#allocation2 + $0x28] sm:$0xff] %vm1389_vm5, %v409_v19 }
  0xac   : > { %477 = vst.msk [vmem:[#allocation2 + $0x2c] sm:$0xf] %vm471_vm6, %v458_v56  ;;  %v944_v26 = vld [vmem:[#allocation2 + $0x20] sm:$0xf] }
  0xad   : > { %476 = vst.msk [vmem:[#allocation2 + $0x24] sm:$0xf] %vm471_vm6, %v456_v18 }
  0xb1   : > { %v392_v20 = vpop.permute.xlu0 %391 }
  0xb2   : > { %v401_v21 = vrot.slane %v392_v20, 4  ;;  %v394_v22 = vpop.permute.xlu1 %393  ;;  %v1070_v23 = vld [vmem:[#allocation2 + $0x24] sm:$0xf0] }
  0xb3   : > { %v946_v24 = vld [vmem:[#allocation2 + $0x28] sm:$0xf0]  ;;  %v945_v28 = vor.u32 %v1070_v23, %v944_v26  ;;  %v402_v30 = vrot.slane %v394_v22, 4 }
  0xb4   : > { %v410_v25 = vsel %vm403_vm4, %v401_v21, %v392_v20  ;;  %v1069_v27 = vld [vmem:[#allocation2 + $0x24] sm:$0xf] }
  0xb5   : > { %429 = vst.msk [vmem:[#allocation2 + $0x30] sm:$0xff] %vm1389_vm5, %v410_v25  ;;  %v949_v29 = vor.u32 %v1069_v27, %v946_v24  ;;  %v411_v33 = vsel %vm403_vm4, %v402_v30, %v394_v22 }
  0xb7   : > { %699 = vmatmul.bf16.gmra.mxu0 %v945_v28  ;;  %757 = vmatmul.bf16.gmra.mxu2 %v945_v28 }
  0xb8   : > { %1056 = vmatmul.msk.bf16.gmra.mxu1 %vm668_vm7, %v949_v29  ;;  %1060 = vmatmul.msk.bf16.gmra.mxu3 %vm668_vm7, %v949_v29 }
  0xb9   : > { %v345_v31 = vpop.permute.xlu0 %344 }
  0xba   : > { %362 = vst.msk [vmem:[#allocation2 + $0x38] sm:$0xf] %vm354_vm1, %v345_v31  ;;  %v460_v34 = vpop.permute.xlu1 %459 }
  0xbb   : > { %430 = vst.msk [vmem:[#allocation2 + $0x38] sm:$0xff] %vm1389_vm5, %v411_v33 }
  0xbc   : > { %479 = vst.msk [vmem:[#allocation2 + $0x3c] sm:$0xf] %vm471_vm6, %v462_v32  ;;  %v952_v37 = vld [vmem:[#allocation2 + $0x30] sm:$0xf] }
  0xbd   : > { %478 = vst.msk [vmem:[#allocation2 + $0x34] sm:$0xf] %vm471_vm6, %v460_v34 }
  0xc2   : > { %v1072_v35 = vld [vmem:[#allocation2 + $0x34] sm:$0xf0] }
  0xc3   : > { %v954_v36 = vld [vmem:[#allocation2 + $0x38] sm:$0xf0]  ;;  %v953_v39 = vor.u32 %v1072_v35, %v952_v37 }
  0xc4   : > { %v1071_v38 = vld [vmem:[#allocation2 + $0x34] sm:$0xf] }
  0xc5   : > { %v957_v40 = vor.u32 %v1071_v38, %v954_v36 }
  0xc7   : > { %704 = vmatmul.bf16.gmra.mxu0 %v953_v39  ;;  %762 = vmatmul.bf16.gmra.mxu2 %v953_v39 }
  0xc8   : > { %1057 = vmatmul.msk.bf16.gmra.mxu1 %vm668_vm7, %v957_v40  ;;  %1061 = vmatmul.msk.bf16.gmra.mxu3 %vm668_vm7, %v957_v40 }
 0x114   : > { %v690_v41 = vpop.f32.mrf.mxu0 }
 0x115   : > { %v719_v42 = vpop.f32.mrf.mxu1 }
 0x116   : > { %v720_v45 = vadd.f32 %v719_v42, %v690_v41 }
 0x11a   : > { %v748_v43 = vpop.f32.mrf.mxu2 }
 0x11b   : > { %v777_v44 = vpop.f32.mrf.mxu3 }
 0x11c   : > { %v778_v46 = vadd.f32 %v777_v44, %v748_v43  ;;  %v692_v47 = vpop.f32.mrf.mxu0 }
 0x11d   : > { %v721_v49 = vpop.f32.mrf.mxu1 }
 0x11e   : > { %v797_v50 = vpack.c.bf16 %v778_v46, %v720_v45  ;;  %v722_v53 = vadd.f32 %v721_v49, %v692_v47 }
 0x120   : > { %808 = vst.msk [vmem:[%s1453_s21] sm:$0xff] %vm1455_vm10, %v797_v50 }
 0x122   : > { %v750_v51 = vpop.f32.mrf.mxu2 }
 0x123   : > { %v779_v52 = vpop.f32.mrf.mxu3 }
 0x124   : > { %v780_v54 = vadd.f32 %v779_v52, %v750_v51  ;;  %v695_v55 = vpop.f32.mrf.mxu0 }
 0x125   : > { %v724_v56 = vpop.f32.mrf.mxu1 }
 0x126   : > { %v798_v57 = vpack.c.bf16 %v780_v54, %v722_v53  ;;  %v725_v60 = vadd.f32 %v724_v56, %v695_v55 }
 0x128   : > { %809 = vst.msk [vmem:[%s1453_s21 + $0x8] sm:$0xff] %vm1455_vm10, %v798_v57 }
 0x12a   : > { %v753_v58 = vpop.f32.mrf.mxu2 }
 0x12b   : > { %v782_v59 = vpop.f32.mrf.mxu3 }
 0x12c   : > { %v783_v61 = vadd.f32 %v782_v59, %v753_v58  ;;  %v697_v62 = vpop.f32.mrf.mxu0 }
 0x12d   : > { %v726_v63 = vpop.f32.mrf.mxu1 }
 0x12e   : > { %v799_v0 = vpack.c.bf16 %v783_v61, %v725_v60  ;;  %v727_v3 = vadd.f32 %v726_v63, %v697_v62 }
 0x130   : > { %810 = vst.msk [vmem:[%s1453_s21 + $0x10] sm:$0xff] %vm1455_vm10, %v799_v0 }
 0x132   : > { %v755_v1 = vpop.f32.mrf.mxu2 }
 0x133   : > { %v784_v2 = vpop.f32.mrf.mxu3 }
 0x134   : > { %v785_v4 = vadd.f32 %v784_v2, %v755_v1  ;;  %v700_v5 = vpop.f32.mrf.mxu0 }
 0x135   : > { %v729_v6 = vpop.f32.mrf.mxu1 }
 0x136   : > { %v800_v7 = vpack.c.bf16 %v785_v4, %v727_v3  ;;  %v730_v10 = vadd.f32 %v729_v6, %v700_v5 }
 0x138   : > { %811 = vst.msk [vmem:[%s1453_s21 + $0x18] sm:$0xff] %vm1455_vm10, %v800_v7 }
 0x13a   : > { %v758_v8 = vpop.f32.mrf.mxu2 }
 0x13b   : > { %v787_v9 = vpop.f32.mrf.mxu3 }
 0x13c   : > { %v788_v11 = vadd.f32 %v787_v9, %v758_v8  ;;  %v702_v12 = vpop.f32.mrf.mxu0 }
 0x13d   : > { %v731_v13 = vpop.f32.mrf.mxu1 }
 0x13e   : > { %v801_v14 = vpack.c.bf16 %v788_v11, %v730_v10  ;;  %v732_v17 = vadd.f32 %v731_v13, %v702_v12 }
 0x140   : > { %812 = vst.msk [vmem:[%s1453_s21 + $0x20] sm:$0xff] %vm1455_vm10, %v801_v14 }
 0x142   : > { %v760_v15 = vpop.f32.mrf.mxu2 }
 0x143   : > { %v789_v16 = vpop.f32.mrf.mxu3 }
 0x144   : > { %v790_v18 = vadd.f32 %v789_v16, %v760_v15  ;;  %v705_v20 = vpop.f32.mrf.mxu0 }
 0x145   : > { %v734_v21 = vpop.f32.mrf.mxu1 }
 0x146   : > { %v802_v19 = vpack.c.bf16 %v790_v18, %v732_v17  ;;  %v735_v24 = vadd.f32 %v734_v21, %v705_v20 }
 0x148   : > { %813 = vst.msk [vmem:[%s1453_s21 + $0x28] sm:$0xff] %vm1455_vm10, %v802_v19 }
 0x14a   : > { %v763_v22 = vpop.f32.mrf.mxu2 }
 0x14b   : > { %v792_v23 = vpop.f32.mrf.mxu3 }
 0x14c   : > { %v793_v25 = vadd.f32 %v792_v23, %v763_v22  ;;  %v707_v27 = vpop.f32.mrf.mxu0 }
 0x14d   : > { %v736_v28 = vpop.f32.mrf.mxu1 }
 0x14e   : > { %v803_v26 = vpack.c.bf16 %v793_v25, %v735_v24  ;;  %v737_v31 = vadd.f32 %v736_v28, %v707_v27 }
 0x150   : > { %814 = vst.msk [vmem:[%s1453_s21 + $0x30] sm:$0xff] %vm1455_vm10, %v803_v26 }
 0x152   : > { %v765_v29 = vpop.f32.mrf.mxu2 }
 0x153   : > { %v794_v30 = vpop.f32.mrf.mxu3 }
 0x154   : > { %v795_v32 = vadd.f32 %v794_v30, %v765_v29 }
 0x156   : > { %v804_v33 = vpack.c.bf16 %v795_v32, %v737_v31 }
 0x158   : > { %815 = vst.msk [vmem:[%s1453_s21 + $0x38] sm:$0xff] %vm1455_vm10, %v804_v33 }
 0x159 PF: > { %s15_s18 = sadd.s32 1, %s1114_s18  }
 0x15a   : > { %p12_p4 = scmp.ge.s32.totalorder %s15_s18, 4  }
 0x15c   :  { %14 = sbr.rel (!%p12_p4) target bundleno = 1 (0x1), region = 79 }

// kernel: weighted_permute_mlp.3
= control target key start
LH: loop header
LB: loop body
LE: loop exit
PB: predicated region body
PF: predicated region fallthrough
CT: control target
= control target key end

     0   :  { %12 = vsyncpa [#allocation3], 0  ;;  %s1314_s0 = inlined_call_operand.vmem [shape: bf16[2,64,48], index: 0, kind: input, shape index: {}]   ;;  %s1315_s1 = inlined_call_operand.vmem [shape: bf16[2,64,48], index: 1, kind: input, shape index: {}]   ;;  %s1316_s2 = inlined_call_operand.vmem [shape: bf16[2,64,48], index: 2, kind: input, shape index: {}]   ;;  %s1317_s3 = inlined_call_operand.vmem [shape: bf16[2,64,48], index: 3, kind: input, shape index: {}]   ;;  %s1318_s4 = inlined_call_operand.vmem [shape: f32[2,4,48], index: 4, kind: input, shape index: {}]   ;;  %s1319_s5 = inlined_call_operand.vmem [shape: bf16[48,48], index: 5, kind: input, shape index: {}]   ;;  %s1320_s6 = inlined_call_operand.vmem [shape: f32[1,48], index: 6, kind: input, shape index: {}]   ;;  %s1321_s7 = inlined_call_operand.hbm [shape: f32[2,64,48], index: 7, kind: output, shape index: {}]  }
   0x1   :  { %14 = vsyncpa [#allocation3 + $0x1], 0  ;;  %s1113_s24 = smov 0   ;;  %s1115_s25 = smov 0  }
   0x2   :  { %s1117_s26 = smov 0   ;;  %s1119_s27 = smov 0  }
   0x3   :  { %s1121_s28 = smov 0   ;;  %s1123_s29 = smov 0  }
   0x4 LB: > { %s804_s30 = sadd.s32 4294967295, %s1069_s29   ;;  %s805_s8 = sadd.s32 4294967294, %s1069_s29   ;;  %s1069_s29 = sphi %s1123_s29, %s20_s29   ;;  %s1065_s28 = sphi %s1121_s28, %s1328_s28   ;;  %s1061_s27 = sphi %s1119_s27, %s1327_s27   ;;  %s1057_s26 = sphi %s1117_s26, %s1326_s26   ;;  %s1053_s25 = sphi %s1115_s25, %s1325_s25   ;;  %s1049_s24 = sphi %s1113_s24, %s1324_s24  }
   0x5   : > { %s32_s9 = sadd.s32 1, %s1065_s28  ;;  %s221_s10 = sadd.s32 1, %s1057_s26 }
   0x6   : > { %p34_p0 = scmp.ge.s32.totalorder %s32_s9, 2  ;;  %p231_p1 = scmp.ne.s32.totalorder %s1057_s26, %s1053_s25 }
   0x7   : > { %p232_p2 = scmp.eq.s32.totalorder %s804_s30, 1  ;;  %p237_p3 = scmp.ne.s32.totalorder %s1053_s25, %s1049_s24 }
   0x8   : > { %s1330_s9 = smov (%p34_p0, %s32_s9), 0  ;;  %p238_p5 = scmp.eq.s32.totalorder %s805_s8, 1 }
   0x9   : > { %p1153_p4 = por %p232_p2, %p231_p1  ;;  %s216_s12 = ssub.s32 %s1065_s28, %s1330_s9 }
   0xa   : > { %p808_p6 = scmp.ge.s32.totalorder %s1069_s29, 1  ;;  %p219_p7 = scmp.eq.s32.totalorder %s216_s12, 0 }
   0xb   : > { %p1160_p8 = por %p238_p5, %p237_p3  ;;  %p321_p9 = scmp.lt.s32.totalorder %s1069_s29, 3 }
   0xc   : > { %s1166_s14 = scalar_select %p219_p7, %s1057_s26, %s221_s10  }
   0xd   : > { %p322_p10 = pnand %p808_p6, %p321_p9 }
   0xe   : > { %p389_p11 = scmp.lt.s32.totalorder (!%p322_p10), %s1061_s27, 1  ;;  %s847_s18 = sshll.u32 (!%p322_p10), %s1061_s27, 6 }
   0xf   : > { %325 = sbr.rel (%p322_p10) target bundleno = 201 (0xc9), region = 48  ;;  %s655_s23 = scalar_lea.hbm (!%p322_p10), %s1321_s7, %s847_s18 }
  0x10   : > { %s658_s8 = sshll.u32 (!%p322_p10), %s655_s23, 4  ;;  %s659_s8 = int_to_ptr.hbm [resolvable:$true] %s658_s8 }
  0x11   : > { %s1005_s12 = sshra.s32 (!%p322_p10), %s659_s8, 4  ;;  %s1006_s12 = int_to_ptr.hbm [resolvable:$true] %s1005_s12 }
  0x12   : > { %p1012_p1 = scmp.lt.s32.totalorder (!%p322_p10), %s1006_s12, %s1321_s7 }
  0x14   : > { %v846_v0 = vld [vmem:[%s1319_s5 + $0x10] sm:$0xff]  ;;  %v845_v1 = vld [vmem:[%s1319_s5 + $0x8] sm:$0xff]  ;;  %s390_s19 = scalar_select %p389_p11, %s1061_s27, 1  ;;  %v844_v2 = vld [vmem:[%s1319_s5] sm:$0xff]  ;;  %vm591_vm0 = vcmask 392192  }
  0x15   : > { %609 = vmatpush.bf16.msra.mxu0 %v846_v0  ;;  %924 = vmatpush.bf16.msra.mxu1 %v846_v0 }
  0x16   : > { %925 = vmatpush.bf16.msra.mxu2 %v846_v0  ;;  %926 = vmatpush.bf16.msra.mxu3 %v846_v0  ;;  %s840_s20 = sshll.u32 %s390_s19, 5  ;;  %s818_s21 = sshll.u32 %s390_s19, 2 }
  0x17   : > { %s1182_s10 = scalar_lea.vmem %s1314_s0, %s840_s20  ;;  %s1187_s16 = scalar_lea.vmem %s1315_s1, %s840_s20 }
  0x18   : > { %s1192_s19 = scalar_lea.vmem %s1316_s2, %s840_s20  ;;  %s1197_s30 = scalar_lea.vmem %s1317_s3, %s840_s20  ;;  %v849_v3 = vld [vmem:[%s1182_s10] sm:$0xff]   ;;  %v912_v5 = vld [vmem:[%s1182_s10 + $0x8] sm:$0xff]   ;;  %v913_v44 = vld [vmem:[%s1182_s10 + $0x10] sm:$0xff]  }
  0x19   : > { %610 = vmatpush.bf16.msra.mxu0 %v845_v1  ;;  %927 = vmatpush.bf16.msra.mxu1 %v845_v1  ;;  %v865_v4 = vld [vmem:[%s1187_s16] sm:$0xff]   ;;  %s431_s15 = scalar_lea.vmem %s1318_s4, %s818_s21  ;;  %v850_v6 = vunpack.c.l.bf16 %v849_v3  ;;  %v851_v7 = vunpack.c.h.bf16 %v849_v3  ;;  %v915_v12 = vld [vmem:[%s1187_s16 + $0x8] sm:$0xff]   ;;  %v854_v23 = vunpack.c.l.bf16 %v912_v5  ;;  %v855_v24 = vunpack.c.h.bf16 %v912_v5  ;;  %v916_v53 = vld [vmem:[%s1187_s16 + $0x10] sm:$0xff]   ;;  %s385_s20 = sand.u32 1, %s1053_s25  }
  0x1a   : > { %928 = vmatpush.bf16.msra.mxu2 %v845_v1  ;;  %929 = vmatpush.bf16.msra.mxu3 %v845_v1  ;;  %v866_v8 = vunpack.c.l.bf16 %v865_v4  ;;  %v867_v9 = vunpack.c.h.bf16 %v865_v4  ;;  %v881_v10 = vld [vmem:[%s1192_s19] sm:$0xff]   ;;  %v918_v18 = vld [vmem:[%s1192_s19 + $0x8] sm:$0xff]   ;;  %v870_v25 = vunpack.c.l.bf16 %v915_v12  ;;  %v871_v26 = vunpack.c.h.bf16 %v915_v12  ;;  %v919_v54 = vld [vmem:[%s1192_s19 + $0x10] sm:$0xff]   ;;  %s809_s21 = sshll.u32 %s385_s20, 6  ;;  %s642_s27 = scalar_lea.sflag [#allocation3], %s385_s20 }
  0x1b   : > { %v897_v11 = vld [vmem:[%s1197_s30] sm:$0xff]   ;;  %v882_v14 = vunpack.c.l.bf16 %v881_v10  ;;  %v883_v15 = vunpack.c.h.bf16 %v881_v10  ;;  %v886_v30 = vunpack.c.l.bf16 %v918_v18  ;;  %v921_v35 = vld [vmem:[%s1197_s30 + $0x8] sm:$0xff]   ;;  %v887_v43 = vunpack.c.h.bf16 %v918_v18  ;;  %v922_v3 = vld [vmem:[%s1197_s30 + $0x10] sm:$0xff]   ;;  %s387_s17 = scalar_lea.vmem [#allocation2], %s809_s21 }
  0x1c   : > { %v434_v13 = vld [vmem:[%s431_s15] sm:$0xf]  ;;  %v898_v16 = vunpack.c.l.bf16 %v897_v11  ;;  %v899_v17 = vunpack.c.h.bf16 %v897_v11  ;;  %v902_v47 = vunpack.c.l.bf16 %v921_v35  ;;  %v903_v48 = vunpack.c.h.bf16 %v921_v35  ;;  %v914_v4 = vld [vmem:[%s1182_s10 + $0x18] sm:$0xff]   ;;  %s1007_s15 = scalar_lea.hbm %s1006_s12, 64 }
  0x1d   : > { %v1209_v19 = vperm.slane %v434_v13, 0  ;;  %v1211_v20 = vperm.slane %v434_v13, 1  ;;  %v1213_v21 = vperm.slane %v434_v13, 2  ;;  %v1215_v22 = vperm.slane %v434_v13, 3  ;;  %611 = vmatpush.bf16.msra.mxu0 %v844_v2  ;;  %930 = vmatpush.bf16.msra.mxu1 %v844_v2  ;;  %v917_v13 = vld [vmem:[%s1187_s16 + $0x18] sm:$0xff]   ;;  %p1008_p12 = scmp.ne.s32.totalorder %s1006_s12, %s1007_s15  ;;  %s1011_s16 = scalar_lea.hbm %s1321_s7, 128 }
  0x1e   : > { %931 = vmatpush.bf16.msra.mxu2 %v844_v2  ;;  %932 = vmatpush.bf16.msra.mxu3 %v844_v2  ;;  %v858_v58 = vunpack.c.l.bf16 %v913_v44  ;;  %v859_v62 = vunpack.c.h.bf16 %v913_v44  ;;  %v874_v0 = vunpack.c.l.bf16 %v916_v53  ;;  %v875_v1 = vunpack.c.h.bf16 %v916_v53  ;;  %p1013_p2 = scmp.lt.s32.totalorder %s1011_s16, %s1007_s15 }
  0x1f   : > { %v452_v27 = vmul.f32 %v850_v6, %v1209_v19  ;;  %v453_v28 = vmul.f32 %v851_v7, %v1209_v19  ;;  %v477_v29 = vmul.f32 %v866_v8, %v1211_v20  ;;  %v478_v31 = vmul.f32 %v867_v9, %v1211_v20  ;;  %p1009_p13 = pnand %p1008_p12, %p1153_p4 }
  0x20   : > { %v510_v32 = vmul.f32 %v882_v14, %v1213_v21  ;;  %v511_v33 = vmul.f32 %v883_v15, %v1213_v21  ;;  %v543_v34 = vmul.f32 %v898_v16, %v1215_v22  ;;  %v544_v37 = vmul.f32 %v899_v17, %v1215_v22  ;;  %p1014_p3 = por %p1013_p2, %p1012_p1 }
  0x21   : > { %v485_v36 = vadd.f32 %v477_v29, %v452_v27  ;;  %v454_v38 = vmul.f32 %v854_v23, %v1209_v19  ;;  %v455_v39 = vmul.f32 %v855_v24, %v1209_v19  ;;  %v486_v40 = vadd.f32 %v478_v31, %v453_v28  ;;  %v923_v27 = vld [vmem:[%s1197_s30 + $0x18] sm:$0xff]   ;;  %s656_s30 = sshll.u32 %s387_s17, 4  ;;  %p1010_p0 = pneg %p1009_p13  ;;  %s657_s30 = int_to_ptr.vmem [resolvable:$true] %s656_s30 }
  0x22   : > { %v479_v41 = vmul.f32 %v870_v25, %v1211_v20  ;;  %v480_v42 = vmul.f32 %v871_v26, %v1211_v20  ;;  %v512_v46 = vmul.f32 %v886_v30, %v1213_v21  ;;  %v513_v52 = vmul.f32 %v887_v43, %v1213_v21  ;;  %v920_v26 = vld [vmem:[%s1192_s19 + $0x18] sm:$0xff]  }
  0x23   : > { %v518_v45 = vadd.f32 %v510_v32, %v485_v36  ;;  %v519_v49 = vadd.f32 %v511_v33, %v486_v40  ;;  %v545_v56 = vmul.f32 %v902_v47, %v1215_v22  ;;  %v546_v57 = vmul.f32 %v903_v48, %v1215_v22  ;;  %p1015_p5 = pnand %p1014_p3, %p1010_p0 }
  0x24   : > { %v487_v50 = vadd.f32 %v479_v41, %v454_v38  ;;  %v488_v51 = vadd.f32 %v480_v42, %v455_v39  ;;  %v456_v63 = vmul.f32 %v858_v58, %v1209_v19  ;;  %v890_v2 = vunpack.c.l.bf16 %v919_v54 }
  0x25   : > { %v551_v55 = vadd.f32 %v543_v34, %v518_v45  ;;  %v552_v59 = vadd.f32 %v544_v37, %v519_v49  ;;  %v457_v8 = vmul.f32 %v859_v62, %v1209_v19  ;;  %v481_v9 = vmul.f32 %v874_v0, %v1211_v20 }
  0x26   : > { %v520_v60 = vadd.f32 %v512_v46, %v487_v50  ;;  %v521_v61 = vadd.f32 %v513_v52, %v488_v51  ;;  %v482_v10 = vmul.f32 %v875_v1, %v1211_v20  ;;  %v891_v11 = vunpack.c.h.bf16 %v919_v54 }
  0x27   : > { %v559_v5 = vpack.c.bf16 %v552_v59, %v551_v55  ;;  %v514_v12 = vmul.f32 %v890_v2, %v1213_v21  ;;  %v906_v15 = vunpack.c.l.bf16 %v922_v3  ;;  %v907_v16 = vunpack.c.h.bf16 %v922_v3 }
  0x28   : > { %v553_v6 = vadd.f32 %v545_v56, %v520_v60  ;;  %v554_v7 = vadd.f32 %v546_v57, %v521_v61  ;;  %v862_v17 = vunpack.c.l.bf16 %v914_v4  ;;  %v489_v18 = vadd.f32 %v481_v9, %v456_v63 }
  0x29   : > { %831 = vmatmul.msk.bf16.vlgmr.msra.gmra.mxu0 %vm591_vm0, %v559_v5  ;;  %v490_v23 = vadd.f32 %v482_v10, %v457_v8  ;;  %v515_v24 = vmul.f32 %v891_v11, %v1213_v21  ;;  %v863_v25 = vunpack.c.h.bf16 %v914_v4  ;;  %v547_v28 = vmul.f32 %v906_v15, %v1215_v22 }
  0x2a   : > { %v560_v14 = vpack.c.bf16 %v554_v7, %v553_v6  ;;  %v548_v29 = vmul.f32 %v907_v16, %v1215_v22  ;;  %v458_v30 = vmul.f32 %v862_v17, %v1209_v19  ;;  %v878_v31 = vunpack.c.l.bf16 %v917_v13 }
  0x2b   : > { %v522_v32 = vadd.f32 %v514_v12, %v489_v18  ;;  %v523_v33 = vadd.f32 %v515_v24, %v490_v23  ;;  %v459_v34 = vmul.f32 %v863_v25, %v1209_v19  ;;  %v879_v35 = vunpack.c.h.bf16 %v917_v13 }
  0x2c   : > { %832 = vmatmul.msk.bf16.vlgmr.msra.gmra.mxu1 %vm591_vm0, %v560_v14  ;;  %v483_v36 = vmul.f32 %v878_v31, %v1211_v20  ;;  %v894_v37 = vunpack.c.l.bf16 %v920_v26  ;;  %v895_v38 = vunpack.c.h.bf16 %v920_v26  ;;  %v910_v39 = vunpack.c.l.bf16 %v923_v27 }
  0x2d   : > { %v555_v40 = vadd.f32 %v547_v28, %v522_v32  ;;  %v556_v41 = vadd.f32 %v548_v29, %v523_v33  ;;  %v484_v42 = vmul.f32 %v879_v35, %v1211_v20  ;;  %v911_v43 = vunpack.c.h.bf16 %v923_v27 }
  0x2e   : > { %v491_v44 = vadd.f32 %v483_v36, %v458_v30  ;;  %v516_v45 = vmul.f32 %v894_v37, %v1213_v21  ;;  %v517_v46 = vmul.f32 %v895_v38, %v1213_v21  ;;  %v549_v19 = vmul.f32 %v910_v39, %v1215_v22  ;;  %v990_v21 = vld [vmem:[%s1320_s6] ss:$0 sm:$0xff] }
  0x2f   : > { %v561_v47 = vpack.c.bf16 %v556_v41, %v555_v40  ;;  %v492_v48 = vadd.f32 %v484_v42, %v459_v34  ;;  %v550_v49 = vmul.f32 %v911_v43, %v1215_v22 }
  0x30   : > { %v524_v50 = vadd.f32 %v516_v45, %v491_v44 }
  0x31   : > { %833 = vmatmul.msk.bf16.vlgmr.msra.gmra.mxu2 %vm591_vm0, %v561_v47  ;;  %v525_v51 = vadd.f32 %v517_v46, %v492_v48 }
  0x32   : > { %v557_v52 = vadd.f32 %v549_v19, %v524_v50 }
  0x33   : > { %v558_v20 = vadd.f32 %v550_v49, %v525_v51 }
  0x35   : > { %v562_v53 = vpack.c.bf16 %v558_v20, %v557_v52 }
  0x37   : > { %834 = vmatmul.msk.bf16.vlgmr.msra.gmra.mxu3 %vm591_vm0, %v562_v53 }
  0xa6   : > { %v613_v54 = vpop.f32.mrf.mxu0 }
  0xa7   : > { %v614_v55 = vadd.f32 %v990_v21, %v613_v54 }
  0xa9   : > { %v618_v22 = vpop.f32.mrf.mxu1  ;;  %633 = vst.msk [vmem:[%s387_s17] sm:$0xff] %vm591_vm0, %v614_v55 }
  0xaa   : > { %v619_v56 = vadd.f32 %v990_v21, %v618_v22 }
  0xac   : > { %635 = vst.msk [vmem:[%s387_s17 + $0x10] sm:$0xff] %vm591_vm0, %v619_v56 }
  0xae   : > { %v615_v57 = vpop.f32.mrf.mxu0 }
  0xaf   : > { %v616_v58 = vadd.f32 %v990_v21, %v615_v57 }
  0xb1   : > { %v620_v59 = vpop.f32.mrf.mxu1  ;;  %634 = vst.msk [vmem:[%s387_s17 + $0x8] sm:$0xff] %vm591_vm0, %v616_v58 }
  0xb2   : > { %v621_v60 = vadd.f32 %v990_v21, %v620_v59 }
  0xb4   : > { %636 = vst.msk [vmem:[%s387_s17 + $0x18] sm:$0xff] %vm591_vm0, %v621_v60  ;;  %v623_v61 = vpop.f32.mrf.mxu2 }
  0xb5   : > { %v624_v62 = vadd.f32 %v990_v21, %v623_v61 }
  0xb7   : > { %637 = vst.msk [vmem:[%s387_s17 + $0x20] sm:$0xff] %vm591_vm0, %v624_v62 }
  0xba   : > { %v628_v63 = vpop.f32.mrf.mxu3 }
  0xbb   : > { %v629_v0 = vadd.f32 %v990_v21, %v628_v63 }
  0xbc   : > { %v625_v1 = vpop.f32.mrf.mxu2 }
  0xbd   : > { %639 = vst.msk [vmem:[%s387_s17 + $0x30] sm:$0xff] %vm591_vm0, %v629_v0  ;;  %v626_v2 = vadd.f32 %v990_v21, %v625_v1 }
  0xbf   : > { %638 = vst.msk [vmem:[%s387_s17 + $0x28] sm:$0xff] %vm591_vm0, %v626_v2 }
  0xc2   : > { %v630_v3 = vpop.f32.mrf.mxu3 }
  0xc3   : > { %v631_v4 = vadd.f32 %v990_v21, %v630_v3 }
  0xc5   : > { %640 = vst.msk [vmem:[%s387_s17 + $0x38] sm:$0xff] %vm591_vm0, %v631_v4 }
  0xc6   : > { %1018 = shalt.err (!%p1015_p5)
}
  0xc7   : > { %s1071_s20 = smov 128   ;;  %s1072_s17 = smov 8  }
  0xc8   : > { %933 = dma.vmem_to_hbm [thread:$0]  (%p1153_p4), %s657_s30, 1024, %s659_s8, %s642_s27, %s1071_s20, %s1071_s20, %s1072_s17  }
  0xc9 PF: > { %p939_p6 = scmp.ge.s32.totalorder %s1069_s29, 2  ;;  %s673_s22 = sand.u32 1, %s1049_s24  }
  0xca   : > { %s674_s23 = scalar_lea.sflag [#allocation3], %s673_s22 }
  0xcb   : > { %p936_p7 = pnand %p939_p6, %p1160_p8 }
  0xcd   : > { %p937_p9 = pneg %p936_p7 }
  0xcf   : > { %1044 = dma.done.wait (%p937_p9), %s674_s23, 1024  }
  0xd0   : > { %1046 = vsyncadd (%p937_p9), %s674_s23, 4294966272  ;;  %s20_s29 = sadd.s32 1, %s1069_s29   ;;  %s1324_s24 = smov %s1053_s25 }
  0xd1   : > { %p17_p10 = scmp.ge.s32.totalorder %s20_s29, 4   ;;  %s1325_s25 = smov %s1057_s26 }
  0xd2   : > { %s1326_s26 = smov %s1166_s14  ;;  %s1327_s27 = smov %s1065_s28 }
  0xd3   : > { %s1328_s28 = smov %s1330_s9  ;;  %19 = sbr.rel (!%p17_p10) target bundleno = 4 (0x4), region = 95 }
  0xd8   :  { %680 = vsyncpa [#allocation3], 1 }
  0xd9   :  { %682 = vsyncpa [#allocation3 + $0x1], 1 }

</bundles_post_ra>
